<compile_context>
chip_gen: v5e
topology: v5e:2x2
jax: 0.10.0
libtpu: 0.0.40
codegen_flags: <defaults>
</compile_context>

<pallas_src>
import functools

import jax
import jax.numpy as jnp
from jax.experimental import pallas as pl
from jax.experimental.pallas import tpu as pltpu


def _round_up(x, m):
    return ((x + m - 1) // m) * m


def _default_vmem_limit():
    # Per-generation VMEM budget (v7x has only 64 MiB per TensorCore).
    try:
        cap = int(pltpu.get_tpu_info().vmem_capacity_bytes)
    except Exception:
        cap = 64 * 1024 * 1024
    return max(32 * 1024 * 1024, min(cap // 2, 64 * 1024 * 1024))


_VMEM_LIMIT = _default_vmem_limit()


# ----------------------------------------------------------------------------
# pltpu.roll direction probe (run once, result is a static Python bool)
# ----------------------------------------------------------------------------
def _roll_probe_kernel(x_ref, o_ref):
    o_ref[...] = pltpu.roll(x_ref[...], shift=1, axis=0)


@functools.lru_cache(maxsize=None)
def _roll_is_jnp_like():
    """True if pltpu.roll(x, s)[i] == x[i - s] (i.e. jnp.roll semantics)."""
    x = jnp.broadcast_to(jnp.arange(8, dtype=jnp.float32)[:, None], (8, 128))
    y = pl.pallas_call(
        _roll_probe_kernel,
        out_shape=jax.ShapeDtypeStruct((8, 128), jnp.float32),
    )(x)
    v = float(y[0, 0])
    assert v in (1.0, 7.0), f"unexpected pltpu.roll probe value: {v}"
    return v == 7.0


def _shift_cols(x3, k, roll_jnp):
    """y[r, c, :] = x3[r, c + k, :] (wrapped values land only in the last k cols)."""
    if k == 0:
        return x3
    size = x3.shape[1]
    shift = (size - k) if roll_jnp else k
    return pltpu.roll(x3, shift=shift, axis=1)


# ----------------------------------------------------------------------------
# Pallas kernels
# ----------------------------------------------------------------------------
def _conv1x1_kernel(x_ref, w_ref, b_ref, o_ref):
    # x: (tile_rows, Cin) f32, w: (Cin, Cout) bf16, b: (1, Cout) f32
    a = x_ref[...].astype(jnp.bfloat16)
    acc = jnp.dot(a, w_ref[...], preferred_element_type=jnp.float32)
    o_ref[...] = acc + b_ref[...]


def _conv3x3_topdown_kernel(x_ref, w_ref, b_ref, *rest,
                            H, W, W_pad, n_extra, roll_jnp):
    """3x3 stride-1 pad-1 conv over a zero-padded NHWC tile, with the final
    'lateral (+ bottom_up) + conv' fusion folded into the epilogue."""
    extras = rest[:n_extra]
    td_ref = rest[n_extra]
    out_ref = rest[n_extra + 1]
    cin = x_ref.shape[-1]
    cout = td_ref.shape[-1]

    xv = x_ref[0]                                     # (H+2, W_pad, Cin) f32
    # Width taps via XLU rolls; row taps via leading-dim slices (cheap).
    xs = [_shift_cols(xv, dw, roll_jnp) for dw in range(3)]
    wb = w_ref[...]                                   # (3, 3, Cin, Cout) bf16

    acc = jnp.zeros((H * W_pad, cout), jnp.float32)
    for dh in range(3):
        for dw in range(3):
            # W_pad % 8 == 0 -> this slice + reshape is layout preserving.
            a = xs[dw][dh:dh + H].reshape(H * W_pad, cin).astype(jnp.bfloat16)
            acc = acc + jnp.dot(a, wb[dh, dw],
                                preferred_element_type=jnp.float32)
    acc = acc + b_ref[...]

    td = acc.reshape(H, W_pad, cout)[:, :W, :].reshape(1, H, W, cout)
    td_ref[...] = td
    o = td
    for e in extras:
        o = o + e[...]
    out_ref[...] = o


def _conv3x3_stride2_kernel(xe_ref, xo_ref, w_ref, b_ref, o_ref, *,
                            H_out, W_out, W_half, roll_jnp):
    """3x3 stride-2 pad-1 conv.  The wrapper supplies even/odd column phases of
    the padded image; only the even output rows/columns are ever computed."""
    cin = xe_ref.shape[-1]
    cout = o_ref.shape[-1]
    xe = xe_ref[0]                                    # (2*H_out+2, W_half, Cin)
    xo = xo_ref[0]
    # Width offsets 0 / 1 / 2 of the padded image at even output columns.
    cols = (xe, xo, _shift_cols(xe, 1, roll_jnp))
    wb = w_ref[...]

    acc = jnp.zeros((H_out * W_half, cout), jnp.float32)
    for dh in range(3):
        for dw in range(3):
            a = cols[dw][dh:dh + 2 * H_out]           # rows dh .. dh+2*H_out-1
            a = a.reshape(H_out, 2, W_half, cin)[:, 0]        # rows dh + 2*i
            a = a.reshape(H_out * W_half, cin).astype(jnp.bfloat16)
            acc = acc + jnp.dot(a, wb[dh, dw],
                                preferred_element_type=jnp.float32)

    y = acc.reshape(H_out, W_half, cout)[:, :W_out, :] + b_ref[...]
    o_ref[...] = y.reshape(1, H_out, W_out, cout)


# ----------------------------------------------------------------------------
# Wrappers around pallas_call
# ----------------------------------------------------------------------------
def conv1x1(x_nhwc, w, b):
    """1x1 conv (stride 1, no padding) == per-pixel matmul."""
    n, h, ww, cin = x_nhwc.shape
    cout = w.shape[1]
    rows = n * h * ww
    x2 = x_nhwc.reshape(rows, cin)
    tile = rows if rows <= 2048 else 2048
    grid = (pl.cdiv(rows, tile),)
    out = pl.pallas_call(
        _conv1x1_kernel,
        out_shape=jax.ShapeDtypeStruct((rows, cout), jnp.float32),
        grid=grid,
        in_specs=[
            pl.BlockSpec((tile, cin), lambda i: (i, 0)),
            pl.BlockSpec((cin, cout), lambda i: (0, 0)),
            pl.BlockSpec((1, cout), lambda i: (0, 0)),
        ],
        out_specs=pl.BlockSpec((tile, cout), lambda i: (i, 0)),
        compiler_params=pltpu.CompilerParams(
            dimension_semantics=("parallel",),
            vmem_limit_bytes=_VMEM_LIMIT),
    )(x2, w.astype(jnp.bfloat16), b.reshape(1, cout))
    return out.reshape(n, h, ww, cout)


def conv3x3_topdown_fused(x_small, w, b, extras):
    """Nearest-2x upsample -> 3x3 same conv, with the pyramid fusion
    (out = conv + sum(extras)) done in the kernel epilogue.

    Returns (td_feature, fused_output)."""
    n, hs, ws, c = x_small.shape
    cout = w.shape[-1]
    H, W = 2 * hs, 2 * ws
    wp = max(_round_up(W + 2, 8), 8)

    # TODO(synk): the nearest 2x upsample + zero pad remain XLA index glue
    # (fused under jit); they could be folded into the kernel with in-kernel
    # replication at the cost of extra in-VMEM relayouts.
    up = jnp.repeat(jnp.repeat(x_small, 2, axis=1), 2, axis=2)
    xpad = jnp.pad(up, ((0, 0), (1, 1), (1, wp - 1 - W), (0, 0)))

    n_extra = len(extras)
    kern = functools.partial(_conv3x3_topdown_kernel, H=H, W=W, W_pad=wp,
                             n_extra=n_extra, roll_jnp=_roll_is_jnp_like())
    extra_specs = [pl.BlockSpec((1, H, W, cout), lambda i: (i, 0, 0, 0))
                   for _ in range(n_extra)]
    out_spec = pl.BlockSpec((1, H, W, cout), lambda i: (i, 0, 0, 0))
    td, out = pl.pallas_call(
        kern,
        out_shape=(jax.ShapeDtypeStruct((n, H, W, cout), jnp.float32),
                   jax.ShapeDtypeStruct((n, H, W, cout), jnp.float32)),
        grid=(n,),
        in_specs=[
            pl.BlockSpec((1, H + 2, wp, c), lambda i: (i, 0, 0, 0)),
            pl.BlockSpec((3, 3, c, cout), lambda i: (0, 0, 0, 0)),
            pl.BlockSpec((1, cout), lambda i: (0, 0)),
        ] + extra_specs,
        out_specs=(out_spec, out_spec),
        compiler_params=pltpu.CompilerParams(
            dimension_semantics=("parallel",),
            vmem_limit_bytes=_VMEM_LIMIT),
    )(xpad, w.astype(jnp.bfloat16), b.reshape(1, cout), *extras)
    return td, out


def conv3x3_stride2_fused(prev, w, b):
    """Nearest 0.5x downsample (even-index subsample) -> 3x3 stride-2 pad-1 conv."""
    x = prev[:, ::2, ::2, :]                    # F.interpolate(scale=0.5, nearest)
    n, hi, wi, c = x.shape
    cout = w.shape[-1]
    h_out = (hi + 1) // 2
    w_out = (wi + 1) // 2
    hp = 2 * h_out + 2
    w_half = _round_up(w_out + 1, 8)

    # Zero-pad (1 px conv halo; extra bottom rows only when hi is odd), then
    # split the padded image into even/odd column phases so the kernel only
    # touches even output columns (glue indexing, fused under jit).
    xpad = jnp.pad(x, ((0, 0), (1, hp - 1 - hi), (1, 1), (0, 0)))
    xe = xpad[:, :, 0:2 * w_out + 1:2, :]
    xo = xpad[:, :, 1:2 * w_out:2, :]
    xe = jnp.pad(xe, ((0, 0), (0, 0), (0, w_half - (w_out + 1)), (0, 0)))
    xo = jnp.pad(xo, ((0, 0), (0, 0), (0, w_half - w_out), (0, 0)))

    kern = functools.partial(_conv3x3_stride2_kernel, H_out=h_out, W_out=w_out,
                             W_half=w_half, roll_jnp=_roll_is_jnp_like())
    return pl.pallas_call(
        kern,
        out_shape=jax.ShapeDtypeStruct((n, h_out, w_out, cout), jnp.float32),
        grid=(n,),
        in_specs=[
            pl.BlockSpec((1, hp, w_half, c), lambda i: (i, 0, 0, 0)),
            pl.BlockSpec((1, hp, w_half, c), lambda i: (i, 0, 0, 0)),
            pl.BlockSpec((3, 3, c, cout), lambda i: (0, 0, 0, 0)),
            pl.BlockSpec((1, cout), lambda i: (0, 0)),
        ],
        out_specs=pl.BlockSpec((1, h_out, w_out, cout), lambda i: (i, 0, 0, 0)),
        compiler_params=pltpu.CompilerParams(
            dimension_semantics=("parallel",),
            vmem_limit_bytes=_VMEM_LIMIT),
    )(xe, xo, w.astype(jnp.bfloat16), b.reshape(1, cout))


def _broadcastable(s1, s2):
    return len(s1) == len(s2) and all(
        a == b or a == 1 or b == 1 for a, b in zip(s1, s2))


# ----------------------------------------------------------------------------
# Parameters (deterministic synthetic init; shapes follow the nn.Module __init__)
# ----------------------------------------------------------------------------
def init_params(key, in_channels=(64, 64, 128, 256, 512), out_channels=256):
    params = {"lateral": [], "top_down": [], "bottom_up": []}
    for cin in reversed(in_channels):
        key, k1, k2 = jax.random.split(key, 3)
        w = jax.random.normal(k1, (cin, out_channels), jnp.float32) / jnp.sqrt(cin * 1.0)
        b = jax.random.normal(k2, (out_channels,), jnp.float32) * 0.01
        params["lateral"].append((w, b))
    for name in ("top_down", "bottom_up"):
        for _ in range(len(in_channels) - 1):
            key, k1, k2 = jax.random.split(key, 3)
            w = jax.random.normal(
                k1, (3, 3, out_channels, out_channels), jnp.float32
            ) / jnp.sqrt(9.0 * out_channels)
            b = jax.random.normal(k2, (out_channels,), jnp.float32) * 0.01
            params[name].append((w, b))
    return params


# ----------------------------------------------------------------------------
# Forward pass (mirrors YOLOPAFPN_ResNet18.forward)
# ----------------------------------------------------------------------------
def yolo_pafpn_resnet18_forward(params, x_list_nchw):
    # NCHW (PyTorch convention) -> NHWC for the TPU kernels
    xs = [jnp.transpose(x, (0, 2, 3, 1)) for x in x_list_nchw]

    # lateral 1x1 convs
    lateral = [conv1x1(xi, w, b) for xi, (w, b) in zip(xs, params["lateral"])]

    # bottom-up path first (depends only on lateral[0]) so its features can be
    # folded into the top-down conv epilogues.
    bottom_up = [lateral[0]]
    for i in range(1, len(lateral) - 1):
        w, b = params["bottom_up"][i - 1]
        bottom_up.append(conv3x3_stride2_fused(bottom_up[-1], w, b))

    n_out = min(len(lateral), len(bottom_up))   # zip truncation in the reference
    outs = [None] * n_out

    # top-down path: upsample 2x (nearest) + 3x3 conv; the final
    # "lateral + top_down (+ bottom_up)" add is fused into the conv epilogue.
    td_prev = lateral[-1]
    for i in range(len(lateral) - 2, -1, -1):
        w, b = params["top_down"][i]
        extras = []
        if i < n_out:
            lat = lateral[i]
            extras.append(lat)
            bu = bottom_up[i]
            if _broadcastable(bu.shape, lat.shape):
                extras.append(jnp.broadcast_to(bu, lat.shape))
            # TODO(synk): at levels where the bottom-up feature is spatially
            # incompatible, the PyTorch reference would raise a broadcast
            # error; as before, that term is dropped instead of resized.
        td_i, out_i = conv3x3_topdown_fused(td_prev, w, b, extras)
        if i < n_out:
            outs[i] = out_i
        td_prev = td_i

    # back to NCHW
    return [jnp.transpose(o, (0, 3, 1, 2)) for o in outs]


# ----------------------------------------------------------------------------
# Plain-JAX reference (for a loose numerical sanity check; bf16 MXU inputs)
# ----------------------------------------------------------------------------
def _ref_conv(x, w, b, stride, pad):
    if w.ndim == 2:
        w = w.reshape(1, 1, w.shape[0], w.shape[1])
    y = jax.lax.conv_general_dilated(
        x, w, window_strides=(stride, stride),
        padding=((pad, pad), (pad, pad)),
        dimension_numbers=("NCHW", "HWIO", "NCHW"),
        precision=jax.lax.Precision.HIGHEST)
    return y + b.reshape(1, -1, 1, 1)


def _ref_forward(params, x_list_nchw):
    lat = [_ref_conv(x, w, b, 1, 0)
           for x, (w, b) in zip(x_list_nchw, params["lateral"])]
    td = [lat[-1]]
    for i in range(len(lat) - 2, -1, -1):
        w, b = params["top_down"][i]
        up = jnp.repeat(jnp.repeat(td[0], 2, axis=2), 2, axis=3)
        td.insert(0, _ref_conv(up, w, b, 1, 1))
    bu = [lat[0]]
    for i in range(1, len(lat) - 1):
        w, b = params["bottom_up"][i - 1]
        bu.append(_ref_conv(bu[-1][:, :, ::2, ::2], w, b, 2, 1))
    outs = []
    for l, t, u in zip(lat, td, bu):
        if _broadcastable(u.shape, l.shape):
            outs.append(l + t + jnp.broadcast_to(u, l.shape))
        else:
            outs.append(l + t)
    return outs


# ----------------------------------------------------------------------------
# Demo
# ----------------------------------------------------------------------------
if __name__ == "__main__":
    # Resolve the pltpu.roll rotation convention once (static Python bool).
    _roll_is_jnp_like()

    key = jax.random.PRNGKey(0)
    in_channels = (64, 64, 128, 256, 512)
    out_channels = 256
    N = 2
    base = 32  # x[0] spatial; halves per level so the top-down fusion is well-posed

    key, pkey = jax.random.split(key)
    params = init_params(pkey, in_channels, out_channels)

    # x[i] channel counts follow reversed(in_channels) = (512, 256, 128, 64, 64)
    rev_channels = tuple(reversed(in_channels))
    spatials = [base // (2 ** i) for i in range(len(in_channels))]  # [32,16,8,4,2]

    xs = []
    for c, s in zip(rev_channels, spatials):
        key, k = jax.random.split(key)
        xs.append(jax.random.normal(k, (N, c, s, s), jnp.float32))

    fwd = jax.jit(yolo_pafpn_resnet18_forward)
    outs = fwd(params, xs)
    outs = jax.block_until_ready(outs)

    # sanity: 4 fused pyramid levels, all with out_channels channels (NCHW)
    assert len(outs) == 4
    for o, s in zip(outs, spatials):
        assert o.shape == (N, out_channels, s, s)

    # loose numerical check vs. a plain-JAX f32 reference (bf16 MXU inputs)
    ref_outs = _ref_forward(params, xs)
    for o, r in zip(outs, ref_outs):
        err = float(jnp.linalg.norm(o - r) / (jnp.linalg.norm(r) + 1e-12))
        assert err < 0.05, f"relative L2 error too large: {err}"

    print("KERNEL_OK")
</pallas_src>

<mosaic_0001>
module attributes {stable_mosaic.version = 11 : i64} {
  func.func @_roll_probe_kernel(%arg0: memref<8x128xf32, #tpu.memory_space<vmem>>, %arg1: memref<8x128xf32, #tpu.memory_space<vmem>>) attributes {dimension_semantics = [], scalar_prefetch = 0 : i64, scratch_operands = 0 : i64, tpu.core_type = #tpu.core_type<tc>} {
    %c0 = arith.constant 0 : index
    %c0_0 = arith.constant 0 : index
    %0 = vector.load %arg0[%c0, %c0_0] : memref<8x128xf32, #tpu.memory_space<vmem>>, vector<8x128xf32>
    %c1_i32 = arith.constant 1 : i32
    %1 = tpu.dynamic_rotate %0 by %c1_i32 dim 0 : vector<8x128xf32>, i32 -> vector<8x128xf32>
    %c0_1 = arith.constant 0 : index
    %c0_2 = arith.constant 0 : index
    %2 = vector.load %arg1[%c0_1, %c0_2] : memref<8x128xf32, #tpu.memory_space<vmem>>, vector<8x128xf32>
    tpu.vector_store %arg1[%c0_1, %c0_2], %1 {strides = array<i32>} : memref<8x128xf32, #tpu.memory_space<vmem>>, vector<8x128xf32>,
    return
  }
}

</mosaic_0001>

<bundles_post_ra>
// kernel: tpu_custom_call.1
= control target key start
LH: loop header
LB: loop body
LE: loop exit
PB: predicated region body
PF: predicated region fallthrough
CT: control target
= control target key end

     0   :  { %6 = vsyncpa [#allocation3], 0  ;;  %s115_s0 = inlined_call_operand.hbm [shape: f32[8,128], index: 0, kind: input, shape index: {}]   ;;  %s116_s1 = inlined_call_operand.hbm [shape: f32[8,128], index: 1, kind: output, shape index: {}]  }
   0x1   :  { %7 = vsyncpa [#allocation4], 0  ;;  %s13_s8 = sshll.u32 %s115_s0, 4  ;;  %s97_s9 = smov [#allocation2]   ;;  %s14_s8 = int_to_ptr.hbm [resolvable:$true] %s13_s8 }
   0x2   :  { %s15_s10 = sshll.u32 %s97_s9, 4  ;;  %s16_s10 = int_to_ptr.vmem [resolvable:$true] %s15_s10 }
   0x3   :  { %18 = dma.hbm_to_vmem [thread:$0]  %s14_s8, 128, %s16_s10, [#allocation3]  }
   0x4   :  { %93 = dma.done.wait [#allocation3], 128  }
   0x5   :  { %94 = vsyncadd [#allocation3], 4294967168  ;;  %s98_s11 = smov [#allocation5]   ;;  %s33_s15 = sshll.u32 %s116_s1, 4  ;;  %v23_v0 = vld [vmem:[#allocation2] sm:$0xff]  ;;  %s34_s15 = int_to_ptr.hbm [resolvable:$true] %s33_s15 }
   0x6   :  { %s31_s12 = sshll.u32 %s98_s11, 4  ;;  %v24_v1 = vrot.slane %v23_v0, 7  ;;  %s32_s12 = int_to_ptr.vmem [resolvable:$true] %s31_s12 }
   0x8   :  { %25 = vst [vmem:[#allocation5] sm:$0xff] %v24_v1 }
   0x9   :  { %36 = dma.vmem_to_hbm [thread:$0]  %s32_s12, 128, %s34_s15, [#allocation4]  }
   0xa   :  { %95 = dma.done.wait [#allocation4], 128  }
   0xb   :  { %96 = vsyncadd [#allocation4], 4294967168 }
   0xc   :  { %41 = vsyncpa [#allocation3], 1 }
   0xd   :  { %42 = vsyncpa [#allocation4], 1 }

</bundles_post_ra>
